<compile_context>
chip_gen: v7x
topology: tpu7x:2x2x1
jax: 0.10.0
libtpu: 0.0.40
codegen_flags: <defaults>
</compile_context>

<pallas_src>
import functools

import jax
import jax.numpy as jnp
from jax.experimental import pallas as pl
from jax.experimental.pallas import tpu as pltpu


# ---------------------------------------------------------------------------
# Fused Pallas kernel: fc1 + folded time/b1 bias + ReLU + fc2 over row tiles.
# ---------------------------------------------------------------------------
def fnn_rows_kernel(x_ref, tbias_ref, w1v_ref, w2_ref, b2_ref, o_ref, *,
                    bb, n_nodes):
    # x_ref     : (Bb*N, T)   bf16   node-major value rows of Bb batches
    # tbias_ref : (Bb, 1, H)  f32    per-batch (b1 + time @ W1t)
    # w1v_ref   : (T, H)      bf16   fc1 rows that multiply the value feature
    # w2_ref    : (H, Dout)   bf16
    # b2_ref    : (1, Dout)   f32
    # o_ref     : (Bb*N, Dout) f32
    h = jnp.dot(x_ref[...], w1v_ref[...],
                preferred_element_type=jnp.float32)            # (Bb*N, H) f32

    tb = tbias_ref[...]                                        # (Bb, 1, H) f32
    hidden = tb.shape[-1]
    if bb == 1:
        tb_rows = tb[0]                                        # (1, H) -> bcast
    else:
        # Each batch's bias repeated over its N node rows (static shapes).
        tb_rows = jnp.broadcast_to(tb, (bb, n_nodes, hidden))
        tb_rows = tb_rows.reshape(bb * n_nodes, hidden)

    h = jnp.maximum(h + tb_rows, 0.0)                          # f32 ReLU (VPU)

    out = jnp.dot(h.astype(jnp.bfloat16), w2_ref[...],
                  preferred_element_type=jnp.float32)          # (Bb*N, Dout)
    o_ref[...] = (out + b2_ref[...]).astype(o_ref.dtype)


def _choose_batch_chunk(batch, n_nodes, target_rows=256):
    """Whole batches per grid step.

    target_rows ~ MXU M-tile: 256 for v6e/v7x, 128 would suit v5e.  Keeps at
    least 2 grid steps when the batch allows it (v7x has 2 TensorCores) and
    makes the chunk a divisor of B so every block is full.
    """
    bb = max(1, min(batch, target_rows // max(n_nodes, 1)))
    while bb > 1 and (batch + bb - 1) // bb < 2:
        bb -= 1
    while batch % bb != 0:
        bb -= 1
    return bb


def _fnn_mlp_pallas(x_rows, tbias, w1v, w2, b2, *, batch, num_nodes):
    """x_rows: (B*N, T) bf16; tbias: (B, 1, H) f32; weights pre-prepared."""
    m_total, t_len = x_rows.shape
    hidden = w1v.shape[1]
    dout = w2.shape[1]

    bb = _choose_batch_chunk(batch, num_nodes)
    grid = batch // bb
    mt = bb * num_nodes                                   # rows per grid step

    kernel = functools.partial(fnn_rows_kernel, bb=bb, n_nodes=num_nodes)

    # Advisory cost: true (unpadded) dout.
    flops = 2 * m_total * t_len * hidden + 2 * m_total * hidden * dout
    bytes_accessed = (x_rows.size * 2 + tbias.size * 4 + w1v.size * 2 +
                      w2.size * 2 + b2.size * 4 + m_total * dout * 4)

    grid_spec = pltpu.PrefetchScalarGridSpec(
        num_scalar_prefetch=0,
        grid=(grid,),
        in_specs=[
            pl.BlockSpec((mt, t_len), lambda i: (i, 0)),        # value rows
            pl.BlockSpec((bb, 1, hidden), lambda i: (i, 0, 0)),  # per-batch bias
            pl.BlockSpec((t_len, hidden), lambda i: (0, 0)),     # W1 (value rows)
            pl.BlockSpec((hidden, dout), lambda i: (0, 0)),      # W2
            pl.BlockSpec((1, dout), lambda i: (0, 0)),           # b2
        ],
        # Unpadded output: true write volume is tiny, masked stores beat a
        # 32x lane-padded HBM writeback + epilogue slice.
        out_specs=pl.BlockSpec((mt, dout), lambda i: (i, 0)),
    )

    return pl.pallas_call(
        kernel,
        out_shape=jax.ShapeDtypeStruct((m_total, dout), jnp.float32),
        grid_spec=grid_spec,
        compiler_params=pltpu.CompilerParams(
            dimension_semantics=("parallel",),
            # Explicit budget: tiles here are KB-scale, well inside v7x's
            # 64 MiB physical / 32 MiB scoped-default VMEM.
            vmem_limit_bytes=32 * 1024 * 1024),
        cost_estimate=pl.CostEstimate(flops=flops, transcendentals=0,
                                      bytes_accessed=bytes_accessed),
    )(x_rows, tbias, w1v, w2, b2)


# ---------------------------------------------------------------------------
# One-time weight preparation (hoisted out of the per-call forward).
# ---------------------------------------------------------------------------
def prepare_fnn_params(params):
    """Split fc1 into value/time rows, cast matmul weights to bf16 once.

    fc1 rows are interleaved [value_t0, time_t0, value_t1, time_t1, ...] in
    the concatenated-feature layout the torch module produces.
    """
    w1 = params["w1"].astype(jnp.float32)                 # (T*2, H)
    return {
        "w1v": w1[0::2, :].astype(jnp.bfloat16),          # (T, H) value rows
        "w1t": w1[1::2, :],                               # (T, H) time rows (f32)
        "b1": params["b1"].reshape(1, -1).astype(jnp.float32),
        "w2": params["w2"].astype(jnp.bfloat16),          # (H, Ow*Od)
        "b2": params["b2"].reshape(1, -1).astype(jnp.float32),
    }


# ---------------------------------------------------------------------------
# Full FNN forward (thin glue; the hot path is one fused Pallas kernel)
# ---------------------------------------------------------------------------
@functools.partial(
    jax.jit,
    static_argnames=("num_nodes", "input_window", "output_window",
                     "output_dim"))
def fnn_forward(inp, input_time, prep, *, num_nodes, input_window,
                output_window, output_dim):
    B, T, N = inp.shape
    assert T == input_window and N == num_nodes
    hidden = prep["w1v"].shape[1]
    dout = output_window * output_dim

    # Value rows, node-major, flattened and cast to bf16 once (halves the
    # dominant HBM read stream into the kernel).
    x_rows = jnp.transpose(inp, (0, 2, 1)).reshape(B * N, T)
    x_rows = x_rows.astype(jnp.bfloat16)

    # Per-batch time contribution folded with b1 (tiny f32 matmul in XLA):
    # the time feature is identical for all N nodes, so compute it once per
    # batch and let the kernel broadcast it over node rows.
    t_feat = input_time[:, :, 0].astype(jnp.float32)              # (B, T)
    tbias = jnp.dot(t_feat, prep["w1t"],
                    precision=jax.lax.Precision.HIGHEST) + prep["b1"]
    tbias = tbias.reshape(B, 1, hidden)                           # (B, 1, H)

    out_rows = _fnn_mlp_pallas(x_rows, tbias, prep["w1v"], prep["w2"],
                               prep["b2"], batch=B, num_nodes=N)
    # (B*N, dout) f32

    # --- output reshuffle (tiny; matches the torch epilogue) ----------------
    out = out_rows.reshape(B, num_nodes, output_window, output_dim)
    out = jnp.transpose(out, (0, 2, 1, 3))                        # (B, Ow, N, Od)
    # NOTE: like torch.squeeze(), this drops *every* size-1 axis (Od here;
    # would also drop B==1 or Ow==1) — kept for parity with the module.
    out = jnp.squeeze(out)
    return out


def init_params(key, din, hidden, dout):
    """Deterministic init matching nn.Linear shapes (uniform +-1/sqrt(fan_in))."""
    k1, k2, k3, k4 = jax.random.split(key, 4)
    lim1 = 1.0 / jnp.sqrt(jnp.float32(din))
    lim2 = 1.0 / jnp.sqrt(jnp.float32(hidden))
    return {
        "w1": jax.random.uniform(k1, (din, hidden), jnp.float32, -lim1, lim1),
        "b1": jax.random.uniform(k2, (1, hidden), jnp.float32, -lim1, lim1),
        "w2": jax.random.uniform(k3, (hidden, dout), jnp.float32, -lim2, lim2),
        "b2": jax.random.uniform(k4, (1, dout), jnp.float32, -lim2, lim2),
    }


if __name__ == "__main__":
    # Small, module-consistent config
    B = 2               # batch
    T = 8               # input_window (lookback)
    N = 16              # num_nodes
    FEAT = 2            # feature_dim (value + time feature)
    H = 32              # hidden_size
    OW = 4              # output_window (horizon)
    OD = 1              # output_dim

    key = jax.random.PRNGKey(0)
    k_in, k_time, k_par = jax.random.split(key, 3)

    inp = jax.random.normal(k_in, (B, T, N), jnp.float32)           # values
    input_time = jax.random.normal(k_time, (B, T, 3), jnp.float32)  # time feats

    params = init_params(k_par, T * FEAT, H, OW * OD)
    prep = prepare_fnn_params(params)     # hoisted: done once, outside the jit

    out = fnn_forward(
        inp, input_time, prep,
        num_nodes=N, input_window=T, output_window=OW, output_dim=OD)
    out = jax.block_until_ready(out)

    # ------------------- references -----------------------------------------
    hi = jax.lax.Precision.HIGHEST

    # (1) pure f32 reference (original module math) — loose tol: kernel uses
    #     bf16 MXU inputs with f32 accumulation (documented choice).
    t_tiled = jnp.tile(input_time[:, :, 0][..., None], (1, 1, N))[..., None]
    xcat = jnp.concatenate([inp[..., None], t_tiled], axis=-1)      # (B,T,N,2)
    xrows = jnp.transpose(xcat, (0, 2, 1, 3)).reshape(B * N, T * FEAT)
    h32 = jnp.maximum(
        jnp.dot(xrows, params["w1"], precision=hi) + params["b1"], 0.0)
    ref32 = jnp.dot(h32, params["w2"], precision=hi) + params["b2"]
    ref32 = jnp.squeeze(jnp.transpose(ref32.reshape(B, N, OW, OD), (0, 2, 1, 3)))

    # (2) kernel-quantized reference (same bf16 value path, f32 time path,
    #     f32 accumulation) — tight tolerance.
    q = lambda a: a.astype(jnp.bfloat16).astype(jnp.float32)
    xv = jnp.transpose(inp, (0, 2, 1)).reshape(B * N, T)            # value rows
    tb = jnp.dot(input_time[:, :, 0], params["w1"][1::2, :],
                 precision=hi) + params["b1"].reshape(1, H)          # (B, H)
    tb_rows = jnp.repeat(tb, N, axis=0)                              # (B*N, H)
    hq = jnp.maximum(
        jnp.dot(q(xv), q(params["w1"][0::2, :]), precision=hi) + tb_rows, 0.0)
    refq = jnp.dot(q(hq), q(params["w2"]), precision=hi) + params["b2"]
    refq = jnp.squeeze(jnp.transpose(refq.reshape(B, N, OW, OD), (0, 2, 1, 3)))

    assert out.shape == ref32.shape, (out.shape, ref32.shape)
    assert jnp.allclose(out, refq, atol=2e-3, rtol=2e-3), \
        float(jnp.max(jnp.abs(out - refq)))
    assert jnp.allclose(out, ref32, atol=5e-2, rtol=5e-2), \
        float(jnp.max(jnp.abs(out - ref32)))
    print("KERNEL_OK")
</pallas_src>

<mosaic_0001>
module attributes {stable_mosaic.version = 11 : i64} {
  func.func @fnn_rows_kernel(%arg0: i32, %arg1: memref<16x8xbf16, #tpu.memory_space<vmem>>, %arg2: memref<1x1x32xf32, #tpu.memory_space<vmem>>, %arg3: memref<8x32xbf16, #tpu.memory_space<vmem>>, %arg4: memref<32x4xbf16, #tpu.memory_space<vmem>>, %arg5: memref<1x4xf32, #tpu.memory_space<vmem>>, %arg6: memref<16x4xf32, #tpu.memory_space<vmem>>) attributes {dimension_semantics = [#tpu.dimension_semantics<parallel>], iteration_bounds = array<i64: 2>, scalar_prefetch = 0 : i64, scratch_operands = 0 : i64, tpu.core_type = #tpu.core_type<tc>, window_params = [{transform_indices = @transform_0, window_bounds = array<i64: 16, 8>}, {transform_indices = @transform_1, window_bounds = array<i64: 1, 1, 32>}, {pipeline_mode = #tpu.pipeline_mode<synchronous>, transform_indices = @transform_2, window_bounds = array<i64: 8, 32>}, {pipeline_mode = #tpu.pipeline_mode<synchronous>, transform_indices = @transform_3, window_bounds = array<i64: 32, 4>}, {pipeline_mode = #tpu.pipeline_mode<synchronous>, transform_indices = @transform_4, window_bounds = array<i64: 1, 4>}, {transform_indices = @transform_5, window_bounds = array<i64: 16, 4>}]} {
    %c0 = arith.constant 0 : index
    %c0_0 = arith.constant 0 : index
    %0 = vector.load %arg1[%c0, %c0_0] : memref<16x8xbf16, #tpu.memory_space<vmem>>, vector<16x8xbf16>
    %c0_1 = arith.constant 0 : index
    %c0_2 = arith.constant 0 : index
    %1 = vector.load %arg3[%c0_1, %c0_2] : memref<8x32xbf16, #tpu.memory_space<vmem>>, vector<8x32xbf16>
    %cst = arith.constant dense<0.000000e+00> : vector<16x32xf32>
    %2 = tpu.matmul %0, %1, %cst {dimension_numbers = #tpu.dot_dimension_numbers<[1], [0], [0], [1], [0, 0, 1, 1], [], []>} : vector<16x8xbf16>, vector<8x32xbf16>, vector<16x32xf32> -> vector<16x32xf32>
    %c0_3 = arith.constant 0 : index
    %c0_4 = arith.constant 0 : index
    %c0_5 = arith.constant 0 : index
    %3 = vector.load %arg2[%c0_3, %c0_4, %c0_5] : memref<1x1x32xf32, #tpu.memory_space<vmem>>, vector<1x1x32xf32>
    %4 = vector.shape_cast %3 : vector<1x1x32xf32> to vector<1x32xf32>
    %5 = vector.broadcast %4 : vector<1x32xf32> to vector<16x32xf32>
    %6 = arith.addf %2, %5 : vector<16x32xf32>
    %cst_6 = arith.constant 0.000000e+00 : f32
    %7 = vector.broadcast %cst_6 : f32 to vector<16x32xf32>
    %8 = arith.maximumf %6, %7 : vector<16x32xf32>
    %9 = arith.truncf %8 : vector<16x32xf32> to vector<16x32xbf16>
    %c0_7 = arith.constant 0 : index
    %c0_8 = arith.constant 0 : index
    %10 = vector.load %arg4[%c0_7, %c0_8] : memref<32x4xbf16, #tpu.memory_space<vmem>>, vector<32x4xbf16>
    %cst_9 = arith.constant dense<0.000000e+00> : vector<16x4xf32>
    %11 = tpu.matmul %9, %10, %cst_9 {dimension_numbers = #tpu.dot_dimension_numbers<[1], [0], [0], [1], [0, 0, 1, 1], [], []>} : vector<16x32xbf16>, vector<32x4xbf16>, vector<16x4xf32> -> vector<16x4xf32>
    %c0_10 = arith.constant 0 : index
    %c0_11 = arith.constant 0 : index
    %12 = vector.load %arg5[%c0_10, %c0_11] : memref<1x4xf32, #tpu.memory_space<vmem>>, vector<1x4xf32>
    %13 = vector.broadcast %12 : vector<1x4xf32> to vector<16x4xf32>
    %14 = arith.addf %11, %13 : vector<16x4xf32>
    %c0_12 = arith.constant 0 : index
    %c0_13 = arith.constant 0 : index
    %15 = vector.load %arg6[%c0_12, %c0_13] : memref<16x4xf32, #tpu.memory_space<vmem>>, vector<16x4xf32>
    tpu.vector_store %arg6[%c0_12, %c0_13], %14 {strides = array<i32>} : memref<16x4xf32, #tpu.memory_space<vmem>>, vector<16x4xf32>,
    return
  }
  func.func @transform_0(%arg0: i32) -> (i32, i32) {
    %c0_i32 = arith.constant 0 : i32
    %c0_i32_0 = arith.constant 0 : i32
    return %arg0, %c0_i32 : i32, i32
  }
  func.func @transform_1(%arg0: i32) -> (i32, i32, i32) {
    %c0_i32 = arith.constant 0 : i32
    %c0_i32_0 = arith.constant 0 : i32
    %c0_i32_1 = arith.constant 0 : i32
    return %arg0, %c0_i32, %c0_i32_0 : i32, i32, i32
  }
  func.func @transform_2(%arg0: i32) -> (i32, i32) {
    %c0_i32 = arith.constant 0 : i32
    %c0_i32_0 = arith.constant 0 : i32
    %c0_i32_1 = arith.constant 0 : i32
    return %c0_i32, %c0_i32_0 : i32, i32
  }
  func.func @transform_3(%arg0: i32) -> (i32, i32) {
    %c0_i32 = arith.constant 0 : i32
    %c0_i32_0 = arith.constant 0 : i32
    %c0_i32_1 = arith.constant 0 : i32
    return %c0_i32, %c0_i32_0 : i32, i32
  }
  func.func @transform_4(%arg0: i32) -> (i32, i32) {
    %c0_i32 = arith.constant 0 : i32
    %c0_i32_0 = arith.constant 0 : i32
    %c0_i32_1 = arith.constant 0 : i32
    return %c0_i32, %c0_i32_0 : i32, i32
  }
  func.func @transform_5(%arg0: i32) -> (i32, i32) {
    %c0_i32 = arith.constant 0 : i32
    %c0_i32_0 = arith.constant 0 : i32
    return %arg0, %c0_i32 : i32, i32
  }
}

</mosaic_0001>

<bundles_post_ra>
// kernel: fnn_forward.1
= control target key start
LH: loop header
LB: loop body
LE: loop exit
PB: predicated region body
PF: predicated region fallthrough
CT: control target
= control target key end

     0   :  { %s536_s18 = smov 0   ;;  %s572_s0 = inlined_call_operand.vmem [shape: bf16[32,8], index: 0, kind: input, shape index: {}]   ;;  %s573_s1 = inlined_call_operand.vmem [shape: f32[2,1,32], index: 1, kind: input, shape index: {}]   ;;  %s574_s2 = inlined_call_operand.vmem [shape: bf16[8,32], index: 2, kind: input, shape index: {}]   ;;  %s575_s3 = inlined_call_operand.vmem [shape: bf16[32,4], index: 3, kind: input, shape index: {}]   ;;  %s576_s4 = inlined_call_operand.vmem [shape: f32[1,4], index: 4, kind: input, shape index: {}]   ;;  %s577_s5 = inlined_call_operand.vmem [shape: f32[32,4], index: 5, kind: output, shape index: {}]  }
   0x1 LB: > { %s446_s19 = sadd.s32 4294967295, %s502_s18   ;;  %p450_p0 = scmp.ge.s32.totalorder %s502_s18, 1  ;;  %s502_s18 = sphi %s536_s18, %s15_s18  }
   0x2   : > { %p196_p1 = scmp.lt.s32.totalorder %s502_s18, 3 }
   0x4   : > { %p197_p2 = pnand %p450_p0, %p196_p1 }
   0x5   : > { %v245_v0 = vld [vmem:[%s574_s2] sm:$0xf] (!%p197_p2)  ;;  %vm262_vm0 = vcmask (!%p197_p2), 1043456   ;;  %s451_s22 = sshll.u32 (!%p197_p2), %s446_s19, 1  ;;  %v504_v1 = vmov (!%p197_p2), 0.0   ;;  %vm505_vm1 = vmmov (!%p197_p2), 0  }
   0x6   : > { %200 = sbr.rel (%p197_p2) target bundleno = 454 (0x1c6), region = 40  ;;  %469 = vmatprep.subr.bf16.mxu0 (!%p197_p2), %v504_v1  ;;  %v264_v2 = vsel (!%p197_p2), %vm262_vm0, %v245_v0, 0  ;;  %471 = vmatprep.mubr.msk.bf16.mxu0 (!%p197_p2), %vm505_vm1, %v504_v1  ;;  %p228_p3 = scmp.lt.s32.totalorder (!%p197_p2), %s451_s22, 3  ;;  %vm258_vm2 = vcmask (!%p197_p2), 64512   ;;  %v494_v4 = vld [vmem:[%s575_s3] sm:$0xff] (!%p197_p2)   ;;  %v495_v5 = vld [vmem:[%s575_s3 + $0x8] sm:$0xff] (!%p197_p2)  }
   0x7   : > { %470 = vmatpush3.bf16.msra.mxu0 (!%p197_p2), %v264_v2  ;;  %475 = vmatprep.subr.bf16.mxu1 (!%p197_p2), %v504_v1  ;;  %p233_p4 = scmp.lt.s32.totalorder (!%p197_p2), %s446_s19, 1  ;;  %vm333_vm3 = vcmask (!%p197_p2), 261120   ;;  %v458_v16 = vld [vmem:[%s576_s4] ss:$0 sm:$0xff] (!%p197_p2)  ;;  %vm378_vm4 = vcmask (!%p197_p2), 31744  }
   0x8   : > { %479 = vmatprep.mubr.msk.bf16.mxu1 (!%p197_p2), %vm505_vm1, %v504_v1  ;;  %476 = vmatpush3.bf16.msra.mxu1 (!%p197_p2), %v494_v4 }
   0x9   : > { %477 = vmatprep.subr.bf16.mxu1 (!%p197_p2), %v504_v1 }
   0xc   : > { %478 = vmatpush3.bf16.msra.mxu1 (!%p197_p2), %v495_v5 }
   0xd   : > { %s579_s22 = smov (!%p228_p3, %s451_s22), 3  ;;  %s581_s19 = smov (!%p233_p4, %s446_s19), 1 }
   0xe   : > { %s452_s23 = sshll.u32 %s579_s22, 2  ;;  %s235_s8 = scalar_lea.vmem %s573_s1, %s581_s19 }
   0xf   : > { %s231_s26 = scalar_lea.vmem %s572_s0, %s452_s23  ;;  %v455_v6 = vld [vmem:[%s235_s8] ss:$0 sm:$0xff]  ;;  %s454_s9 = sshll.u32 %s579_s22, 3 }
  0x10   : > { %v493_v3 = vld [vmem:[%s231_s26] sm:$0xff]   ;;  %s240_s14 = scalar_lea.vmem %s577_s5, %s454_s9 }
  0x11   : > { %472 = vmatmul.mubr.msk.bf16.vlgmr.msra.gmra.mrb[0].mxu0 %vm258_vm2, %v493_v3 }
  0xe4   : > { %v300_v7 = vpop.f32.mrb[0].mxu0 }
  0xe5   : > { %v301_v8 = vadd.f32 %v455_v6, %v300_v7  ;;  %v473_v9 = vpop.f32.mrb[1].mxu0 }
  0xe6   : > { %v303_v10 = vpop.f32.mrb[2].mxu0 }
  0xe7   : > { %v304_v11 = vadd.f32 %v455_v6, %v303_v10  ;;  %v474_v12 = vpop.f32.mrb[3].mxu0  ;;  %v307_v13 = vmax.f32 %v301_v8, 0.0 }
  0xe9   : > { %v308_v14 = vmax.f32 %v304_v11, 0.0 }
  0xeb   : > { %v309_v15 = vpack.c.bf16 %v308_v14, %v307_v13 }
  0xed   : > { %480 = vmatmul.mubr.msk.bf16.vlgmr.msra.gmra.mrb[0].mxu1 %vm333_vm3, %v309_v15 }
 0x1c0   : > { %v371_v17 = vpop.f32.mrb[0].mxu1 }
 0x1c1   : > { %v372_v18 = vadd.f32 %v458_v16, %v371_v17  ;;  %v481_v19 = vpop.f32.mrb[1].mxu1 }
 0x1c2   : > { %v374_v20 = vpop.f32.mrb[2].mxu1 }
 0x1c3   : > { %379 = vst.msk [vmem:[%s240_s14] sm:$0xff] %vm378_vm4, %v372_v18  ;;  %v375_v21 = vadd.f32 %v458_v16, %v374_v20  ;;  %v482_v22 = vpop.f32.mrb[3].mxu1 }
 0x1c5   : > { %380 = vst.msk [vmem:[%s240_s14 + $0x8] sm:$0xff] %vm378_vm4, %v375_v21 }
 0x1c6 PF: > { %s15_s18 = sadd.s32 1, %s502_s18  }
 0x1c7   : > { %p12_p5 = scmp.ge.s32.totalorder %s15_s18, 4  }
 0x1c9   :  { %14 = sbr.rel (!%p12_p5) target bundleno = 1 (0x1), region = 73 }

</bundles_post_ra>
